<compile_context>
chip_gen: v6e
topology: v6e:2x2x1
jax: 0.10.0
libtpu: 0.0.40
codegen_flags: <defaults>
</compile_context>

<pallas_src>
import functools

import jax
import jax.numpy as jnp
from jax import lax
from jax.experimental import pallas as pl
from jax.experimental.pallas import tpu as pltpu


_LANES = 128
_BLOCK_BYTES = 2 * 1024 * 1024      # transport bytes per input block (per buffer)
_NUM_SPLITS = 2                     # megacore sharding on v7x; harmless on v5e/v6e
_VMEM_LIMIT_BYTES = 32 * 1024 * 1024


def _sum_sq_kernel(pred_ref, real_ref, out_ref, *, block_rows, acc_rows,
                   tiles_per_split, full_tiles, rows):
    """Accumulate per-split partial sums of (real - pred)^2 into out_ref."""
    s = pl.program_id(0)                      # split index ("parallel")
    t = pl.program_id(1)                      # tile-within-split ("arbitrary")
    g = s * tiles_per_split + t               # global (unclamped) row-tile index

    @pl.when(t == 0)
    def _init():
        out_ref[...] = jnp.zeros_like(out_ref)

    p = pred_ref[...]
    r = real_ref[...]
    if jnp.issubdtype(p.dtype, jnp.floating):
        # Difference in the transport dtype (matches torch), widen to f32 after:
        # fewer VPU ops per byte for 16-bit transport.
        d = (r - p).astype(jnp.float32)
    else:
        d = r.astype(jnp.float32) - p.astype(jnp.float32)
    dd = d * d

    # Tiles entirely inside the valid row range: plain VPU accumulate.
    # The (-1, acc_rows, 128) reshape is a free vreg re-labeling when
    # block_rows % 8 == 0, so the axis-0 sum is pure vector adds.
    @pl.when(g < full_tiles)
    def _full():
        out_ref[...] += jnp.sum(dd.reshape(-1, acc_rows, _LANES), axis=0)

    # At most one partial tile (rows % block_rows != 0) plus at most one
    # phantom tile (odd tile count split across 2 cores).  Pallas does NOT
    # zero out-of-bounds block data, so zero the invalid rows before
    # accumulating (jnp.where also guards against NaN/Inf garbage).
    @pl.when(g >= full_tiles)
    def _masked():
        row = lax.broadcasted_iota(jnp.int32, dd.shape, 0) + g * block_rows
        ddm = jnp.where(row < rows, dd, 0.0)
        out_ref[...] += jnp.sum(ddm.reshape(-1, acc_rows, _LANES), axis=0)


def mse(pred, real, *, block_bytes=_BLOCK_BYTES):
    """Mean squared error matching DSN `MSE.forward`: sum((real-pred)^2)/n."""
    assert pred.shape == real.shape, (pred.shape, real.shape)
    n = pred.size

    if pred.dtype != real.dtype:
        ct = jnp.promote_types(pred.dtype, real.dtype)
        pred = pred.astype(ct)
        real = real.astype(ct)
    out_dtype = pred.dtype if jnp.issubdtype(pred.dtype, jnp.floating) else jnp.float32

    if n == 0:
        return jnp.asarray(jnp.nan, out_dtype)

    pred_flat = pred.reshape(-1)
    real_flat = real.reshape(-1)

    rem = n % _LANES                 # static python int
    main_n = n - rem
    rows = main_n // _LANES

    total = jnp.zeros((), jnp.float32)

    if rows > 0:
        itemsize = pred.dtype.itemsize
        sub = max(8, 32 // itemsize)                     # sublanes per packed vreg
        target_rows = max(sub, (block_bytes // (_LANES * itemsize)) // sub * sub)

        if rows <= target_rows:
            block_rows = rows                            # single tile == full extent
        else:
            block_rows = target_rows                     # multiple of 8 (and 16 for bf16)

        total_tiles = -(-rows // block_rows)
        full_tiles = rows // block_rows                  # tiles needing no masking
        num_splits = _NUM_SPLITS if total_tiles >= _NUM_SPLITS else 1
        tiles_per_split = -(-total_tiles // num_splits)
        acc_rows = 8 if block_rows % 8 == 0 else 1       # (8,128) accumulator when possible

        # Free reshape when n is lane-aligned; for ragged n only the prefix is
        # sliced (the <128-element tail is summed outside the kernel below).
        if rem:
            p2 = pred_flat[:main_n].reshape(rows, _LANES)
            r2 = real_flat[:main_n].reshape(rows, _LANES)
        else:
            p2 = pred_flat.reshape(rows, _LANES)
            r2 = real_flat.reshape(rows, _LANES)

        def in_index(s, t):
            # Clamp phantom steps (odd tile count over 2 splits) to a valid
            # block; their contribution is fully masked away in the kernel.
            g = jnp.minimum(s * tiles_per_split + t, total_tiles - 1)
            return (g, 0)

        kernel = functools.partial(
            _sum_sq_kernel,
            block_rows=block_rows, acc_rows=acc_rows,
            tiles_per_split=tiles_per_split, full_tiles=full_tiles, rows=rows)

        partials = pl.pallas_call(
            kernel,
            out_shape=jax.ShapeDtypeStruct((num_splits * acc_rows, _LANES),
                                           jnp.float32),
            grid_spec=pltpu.PrefetchScalarGridSpec(
                num_scalar_prefetch=0,
                grid=(num_splits, tiles_per_split),
                in_specs=[
                    pl.BlockSpec((block_rows, _LANES), in_index),
                    pl.BlockSpec((block_rows, _LANES), in_index),
                ],
                out_specs=pl.BlockSpec((acc_rows, _LANES), lambda s, t: (s, 0)),
            ),
            compiler_params=pltpu.CompilerParams(
                dimension_semantics=("parallel", "arbitrary"),
                vmem_limit_bytes=_VMEM_LIMIT_BYTES,
            ),
        )(p2, r2)

        total = total + jnp.sum(partials)

    if rem:
        # <128-element remainder: negligible, handled by a tiny jnp reduction.
        tp = pred_flat[main_n:].astype(jnp.float32)
        tr = real_flat[main_n:].astype(jnp.float32)
        total = total + jnp.sum(jnp.square(tr - tp))

    # Final scale by 1/n (n is static); dtype follows the inputs (torch semantics).
    return (total * (1.0 / n)).astype(out_dtype)


if __name__ == "__main__":
    key = jax.random.PRNGKey(0)
    ks = jax.random.split(key, 6)

    mse_jit = jax.jit(mse)

    # 1) Lane-aligned f32 (n = 2048): zero-copy reshape, single tile.
    pred = jax.random.normal(ks[0], (2, 4, 16, 16), jnp.float32)
    real = jax.random.normal(ks[1], (2, 4, 16, 16), jnp.float32)
    out = jax.block_until_ready(mse_jit(pred, real))
    ref = jnp.mean((real - pred) ** 2)
    assert out.shape == (), out.shape
    assert bool(jnp.isfinite(out))
    assert bool(jnp.allclose(out, ref, rtol=1e-5, atol=1e-6)), (out, ref)

    # 2) Tiny ragged size (n = 105 < 128): remainder-only path.
    p2 = jax.random.normal(ks[2], (3, 5, 7), jnp.float32)
    r2 = jax.random.normal(ks[3], (3, 5, 7), jnp.float32)
    out2 = jax.block_until_ready(mse_jit(p2, r2))
    ref2 = jnp.mean((r2 - p2) ** 2)
    assert bool(jnp.allclose(out2, ref2, rtol=1e-5, atol=1e-6)), (out2, ref2)

    # 3) bf16 transport, f32 in-kernel accumulation.
    pb = pred.astype(jnp.bfloat16)
    rb = real.astype(jnp.bfloat16)
    out3 = jax.block_until_ready(mse_jit(pb, rb))
    ref3 = jnp.mean((rb.astype(jnp.float32) - pb.astype(jnp.float32)) ** 2)
    assert bool(jnp.allclose(out3.astype(jnp.float32), ref3, rtol=2e-2, atol=2e-2))

    # 4) Multi-tile + 2-way split + partial last tile + phantom tile + ragged
    #    tail, exercised at a small size by shrinking the per-block byte budget.
    mse_small_blocks = jax.jit(functools.partial(mse, block_bytes=8 * 1024))
    p4 = jax.random.normal(ks[4], (2, 3, 37, 41), jnp.float32)   # n = 9102
    r4 = jax.random.normal(ks[5], (2, 3, 37, 41), jnp.float32)
    out4 = jax.block_until_ready(mse_small_blocks(p4, r4))
    ref4 = jnp.mean((r4 - p4) ** 2)
    assert bool(jnp.allclose(out4, ref4, rtol=1e-5, atol=1e-5)), (out4, ref4)

    print("KERNEL_OK")
</pallas_src>

<mosaic_0001>
module attributes {stable_mosaic.version = 11 : i64} {
  func.func @_sum_sq_kernel(%arg0: i32, %arg1: i32, %arg2: memref<16x128xf32, #tpu.memory_space<vmem>>, %arg3: memref<16x128xf32, #tpu.memory_space<vmem>>, %arg4: memref<8x128xf32, #tpu.memory_space<vmem>>) attributes {dimension_semantics = [#tpu.dimension_semantics<parallel>, #tpu.dimension_semantics<arbitrary>], iteration_bounds = array<i64: 1, 1>, scalar_prefetch = 0 : i64, scratch_operands = 0 : i64, tpu.core_type = #tpu.core_type<tc>, window_params = [{transform_indices = @transform_0, window_bounds = array<i64: 16, 128>}, {transform_indices = @transform_1, window_bounds = array<i64: 16, 128>}, {transform_indices = @transform_2, window_bounds = array<i64: 8, 128>}]} {
    %c1_i32 = arith.constant 1 : i32
    %0 = arith.muli %arg0, %c1_i32 : i32
    %1 = arith.addi %0, %arg1 : i32
    %c0_i32 = arith.constant 0 : i32
    %2 = arith.cmpi eq, %arg1, %c0_i32 : i32
    %3 = arith.extui %2 : i1 to i32
    %c0_i32_0 = arith.constant 0 : i32
    %4 = arith.cmpi ne, %3, %c0_i32_0 : i32
    scf.if %4 {
      %cst = arith.constant 0.000000e+00 : f32
      %15 = vector.broadcast %cst : f32 to vector<8x128xf32>
      %c0_8 = arith.constant 0 : index
      %c0_9 = arith.constant 0 : index
      %16 = vector.load %arg4[%c0_8, %c0_9] : memref<8x128xf32, #tpu.memory_space<vmem>>, vector<8x128xf32>
      tpu.vector_store %arg4[%c0_8, %c0_9], %15 {strides = array<i32>} : memref<8x128xf32, #tpu.memory_space<vmem>>, vector<8x128xf32>,
    } else {
    }
    %c0 = arith.constant 0 : index
    %c0_1 = arith.constant 0 : index
    %5 = vector.load %arg2[%c0, %c0_1] : memref<16x128xf32, #tpu.memory_space<vmem>>, vector<16x128xf32>
    %c0_2 = arith.constant 0 : index
    %c0_3 = arith.constant 0 : index
    %6 = vector.load %arg3[%c0_2, %c0_3] : memref<16x128xf32, #tpu.memory_space<vmem>>, vector<16x128xf32>
    %7 = arith.subf %6, %5 : vector<16x128xf32>
    %8 = arith.mulf %7, %7 : vector<16x128xf32>
    %c1_i32_4 = arith.constant 1 : i32
    %9 = arith.cmpi slt, %1, %c1_i32_4 : i32
    %10 = arith.extui %9 : i1 to i32
    %c0_i32_5 = arith.constant 0 : i32
    %11 = arith.cmpi ne, %10, %c0_i32_5 : i32
    scf.if %11 {
      %c0_8 = arith.constant 0 : index
      %c0_9 = arith.constant 0 : index
      %15 = vector.load %arg4[%c0_8, %c0_9] : memref<8x128xf32, #tpu.memory_space<vmem>>, vector<8x128xf32>
      %16 = vector.shape_cast %8 : vector<16x128xf32> to vector<2x8x128xf32>
      %cst = arith.constant dense<0.000000e+00> : vector<8x128xf32>
      %17 = vector.multi_reduction <add>, %16, %cst [0] : vector<2x8x128xf32> to vector<8x128xf32>
      %18 = arith.addf %15, %17 : vector<8x128xf32>
      %c0_10 = arith.constant 0 : index
      %c0_11 = arith.constant 0 : index
      %19 = vector.load %arg4[%c0_10, %c0_11] : memref<8x128xf32, #tpu.memory_space<vmem>>, vector<8x128xf32>
      tpu.vector_store %arg4[%c0_10, %c0_11], %18 {strides = array<i32>} : memref<8x128xf32, #tpu.memory_space<vmem>>, vector<8x128xf32>,
    } else {
    }
    %c1_i32_6 = arith.constant 1 : i32
    %12 = arith.cmpi sge, %1, %c1_i32_6 : i32
    %13 = arith.extui %12 : i1 to i32
    %c0_i32_7 = arith.constant 0 : i32
    %14 = arith.cmpi ne, %13, %c0_i32_7 : i32
    scf.if %14 {
      %15 = tpu.iota {dimensions = array<i32: 0>} : vector<16x128xi32>
      %c16_i32 = arith.constant 16 : i32
      %16 = arith.muli %1, %c16_i32 : i32
      %17 = vector.broadcast %16 : i32 to vector<16x128xi32>
      %18 = arith.addi %15, %17 : vector<16x128xi32>
      %c16_i32_8 = arith.constant 16 : i32
      %19 = vector.broadcast %c16_i32_8 : i32 to vector<16x128xi32>
      %20 = arith.cmpi slt, %18, %19 : vector<16x128xi32>
      %cst = arith.constant 0.000000e+00 : f32
      %21 = vector.broadcast %cst : f32 to vector<16x128xf32>
      %22 = arith.select %20, %8, %21 : vector<16x128xi1>, vector<16x128xf32>
      %c0_9 = arith.constant 0 : index
      %c0_10 = arith.constant 0 : index
      %23 = vector.load %arg4[%c0_9, %c0_10] : memref<8x128xf32, #tpu.memory_space<vmem>>, vector<8x128xf32>
      %24 = vector.shape_cast %22 : vector<16x128xf32> to vector<2x8x128xf32>
      %cst_11 = arith.constant dense<0.000000e+00> : vector<8x128xf32>
      %25 = vector.multi_reduction <add>, %24, %cst_11 [0] : vector<2x8x128xf32> to vector<8x128xf32>
      %26 = arith.addf %23, %25 : vector<8x128xf32>
      %c0_12 = arith.constant 0 : index
      %c0_13 = arith.constant 0 : index
      %27 = vector.load %arg4[%c0_12, %c0_13] : memref<8x128xf32, #tpu.memory_space<vmem>>, vector<8x128xf32>
      tpu.vector_store %arg4[%c0_12, %c0_13], %26 {strides = array<i32>} : memref<8x128xf32, #tpu.memory_space<vmem>>, vector<8x128xf32>,
    } else {
    }
    return
  }
  func.func @transform_0(%arg0: i32, %arg1: i32) -> (i32, i32) {
    %c1_i32 = arith.constant 1 : i32
    %0 = arith.muli %arg0, %c1_i32 : i32
    %1 = arith.addi %0, %arg1 : i32
    %c0_i32 = arith.constant 0 : i32
    %2 = arith.minsi %1, %c0_i32 : i32
    %c0_i32_0 = arith.constant 0 : i32
    %c0_i32_1 = arith.constant 0 : i32
    return %2, %c0_i32_0 : i32, i32
  }
  func.func @transform_1(%arg0: i32, %arg1: i32) -> (i32, i32) {
    %c1_i32 = arith.constant 1 : i32
    %0 = arith.muli %arg0, %c1_i32 : i32
    %1 = arith.addi %0, %arg1 : i32
    %c0_i32 = arith.constant 0 : i32
    %2 = arith.minsi %1, %c0_i32 : i32
    %c0_i32_0 = arith.constant 0 : i32
    %c0_i32_1 = arith.constant 0 : i32
    return %2, %c0_i32_0 : i32, i32
  }
  func.func @transform_2(%arg0: i32, %arg1: i32) -> (i32, i32) {
    %c0_i32 = arith.constant 0 : i32
    %c0_i32_0 = arith.constant 0 : i32
    return %arg0, %c0_i32 : i32, i32
  }
}

</mosaic_0001>

<bundles_post_ra>
// kernel: mse.1
= control target key start
LH: loop header
LB: loop body
LE: loop exit
PB: predicated region body
PF: predicated region fallthrough
CT: control target
= control target key end

     0   :  { %s163_s0 = inlined_call_operand.vmem [shape: f32[16,128], index: 0, kind: input, shape index: {}]   ;;  %s164_s1 = inlined_call_operand.vmem [shape: f32[16,128], index: 1, kind: input, shape index: {}]   ;;  %s165_s2 = inlined_call_operand.vmem [shape: f32[8,128], index: 2, kind: output, shape index: {}]  }
   0x1   :  { %v81_v0 = vld [vmem:[%s163_s0] sm:$0xff]  ;;  %v82_v1 = vld [vmem:[%s163_s0 + $0x8] sm:$0xff] }
   0x2   :  { %v83_v2 = vld [vmem:[%s164_s1] sm:$0xff]  ;;  %v84_v3 = vld [vmem:[%s164_s1 + $0x8] sm:$0xff] }
   0x3   :  { %v85_v4 = vsub.f32 %v83_v2, %v81_v0  ;;  %v86_v5 = vsub.f32 %v84_v3, %v82_v1 }
   0x5   :  { %v87_v6 = vmul.f32 %v85_v4, %v85_v4  ;;  %v88_v7 = vmul.f32 %v86_v5, %v86_v5 }
   0x7   :  { %v94_v8 = vadd.f32 %v88_v7, %v87_v6 }
   0x9   :  { %96 = vst [vmem:[%s165_s2] sm:$0xff] %v94_v8 }

</bundles_post_ra>
